<compile_context>
chip_gen: v6e
topology: v6e:2x2x1
jax: 0.10.0
libtpu: 0.0.40
codegen_flags: <defaults>
</compile_context>

<pallas_src>
import jax
import jax.numpy as jnp
from jax.experimental import pallas as pl
from jax.experimental.pallas import tpu as pltpu

_NCORES = 2                   # v7x has 2 TensorCores; harmless on v5e/v6e.
_VMEM_BLOCK_BYTES = 1 << 20   # ~1 MiB input block target per grid step.


def _smooth_sums_kernel(x_ref, dx2_acc, dxdy_acc, dy2_acc):
    b = pl.program_id(1)

    # Zero this core's resident accumulators at the start of its batch sweep.
    @pl.when(b == 0)
    def _():
        dx2_acc[...] = jnp.zeros_like(dx2_acc)
        dxdy_acc[...] = jnp.zeros_like(dxdy_acc)
        dy2_acc[...] = jnp.zeros_like(dy2_acc)

    x = x_ref[...].astype(jnp.float32)          # (TB, H, W)
    w = x.shape[-1]

    # Second-order differences built directly from x (no dx/dy intermediates),
    # same arithmetic order as the PyTorch reference (diff of first diffs).
    dx2 = (x[:, :, 2:] - x[:, :, 1:-1]) - (x[:, :, 1:-1] - x[:, :, :-2])      # (TB, H,   W-2)
    dxdy = (x[:, 1:, 1:] - x[:, 1:, :-1]) - (x[:, :-1, 1:] - x[:, :-1, :-1])  # (TB, H-1, W-1)
    dy2 = (x[:, 2:, :] - x[:, 1:-1, :]) - (x[:, 1:-1, :] - x[:, :-2, :])      # (TB, H-2, W)

    # Cheap partial reduction: collapse batch + sublane axes, keep lanes.
    p_dx2 = jnp.sum(jnp.abs(dx2), axis=(0, 1)).reshape(1, 1, -1)    # (1, 1, W-2)
    p_dxdy = jnp.sum(jnp.abs(dxdy), axis=(0, 1)).reshape(1, 1, -1)  # (1, 1, W-1)
    p_dy2 = jnp.sum(jnp.abs(dy2), axis=(0, 1)).reshape(1, 1, -1)    # (1, 1, W)

    dx2_acc[:, :, 0:w - 2] = dx2_acc[:, :, 0:w - 2] + p_dx2
    dxdy_acc[:, :, 0:w - 1] = dxdy_acc[:, :, 0:w - 1] + p_dxdy
    dy2_acc[...] = dy2_acc[...] + p_dy2


def _smooth_sums(x_bhw):
    """Absolute-value sums of (dx2, dxdy, dy2) for a (B, H, W) array."""
    B, H, W = x_bhw.shape
    itemsize = jnp.dtype(x_bhw.dtype).itemsize

    # Block sizing: ~1 MiB of input per step; intermediates are ~6-8x that,
    # still far below the 32 MiB scoped-VMEM default on v7x.
    tb = int(max(1, min(pl.cdiv(B, _NCORES),
                        _VMEM_BLOCK_BYTES // (H * W * itemsize))))
    nb = int(pl.cdiv(B, _NCORES * tb))
    b_pad = _NCORES * nb * tb
    if b_pad != B:
        # Zero images contribute exactly 0 to every |.| sum.
        x_bhw = jnp.pad(x_bhw, ((0, b_pad - B), (0, 0), (0, 0)))

    acc_spec = pl.BlockSpec((1, 1, W), lambda c, b: (c, 0, 0))
    sums = pl.pallas_call(
        _smooth_sums_kernel,
        out_shape=tuple(jax.ShapeDtypeStruct((_NCORES, 1, W), jnp.float32)
                        for _ in range(3)),
        grid_spec=pltpu.PrefetchScalarGridSpec(
            num_scalar_prefetch=0,
            grid=(_NCORES, nb),
            in_specs=[pl.BlockSpec((tb, H, W), lambda c, b: (c * nb + b, 0, 0))],
            out_specs=[acc_spec, acc_spec, acc_spec],
        ),
        compiler_params=pltpu.CompilerParams(
            # axis 0: shard batch over TensorCores (2x on v7x);
            # axis 1: sequential accumulation over batch blocks.
            dimension_semantics=("parallel", "arbitrary")),
    )(x_bhw)

    # Final tiny cross-lane / cross-core reduction in plain XLA.
    return [jnp.sum(s) for s in sums]


def smooth_loss(pred_map):
    """Pallas implementation of SmoothLoss.forward.

    `pred_map` is an (N, C, H, W) array or a tuple/list of such arrays."""
    if not isinstance(pred_map, (tuple, list)):
        pred_map = [pred_map]
    loss = jnp.float32(0.0)
    weight = 1.0
    for scaled in pred_map:
        N, C, H, W = scaled.shape
        if H < 3 or W < 3:
            raise ValueError(
                f"SmoothLoss requires H >= 3 and W >= 3 (got H={H}, W={W}).")
        # TODO(synk): for very narrow maps (W << 128) lane-packing several
        # images side-by-side along W would further lift VPU lane utilization.
        x = scaled.reshape(N * C, H, W)
        s_dx2, s_dxdy, s_dy2 = _smooth_sums(x)
        n_dx2 = N * C * H * (W - 2)
        n_dxdy = N * C * (H - 1) * (W - 1)   # == n_dydx
        n_dy2 = N * C * (H - 2) * W
        # dydx is numerically identical to dxdy (finite differences commute),
        # so its mean term reuses s_dxdy / n_dxdy a second time.
        loss = loss + (s_dx2 / n_dx2 + 2.0 * (s_dxdy / n_dxdy)
                       + s_dy2 / n_dy2) * weight
        weight /= 2.3
    return loss


def _ref_smooth_loss(pred_map):
    """Pure-JAX reference mirroring the PyTorch module."""
    if not isinstance(pred_map, (tuple, list)):
        pred_map = [pred_map]
    loss = 0.0
    weight = 1.0
    for p in pred_map:
        dy = p[:, :, 1:] - p[:, :, :-1]
        dx = p[:, :, :, 1:] - p[:, :, :, :-1]
        dx2 = dx[:, :, :, 1:] - dx[:, :, :, :-1]
        dxdy = dx[:, :, 1:] - dx[:, :, :-1]
        dydx = dy[:, :, :, 1:] - dy[:, :, :, :-1]
        dy2 = dy[:, :, 1:] - dy[:, :, :-1]
        loss = loss + (jnp.mean(jnp.abs(dx2)) + jnp.mean(jnp.abs(dxdy))
                       + jnp.mean(jnp.abs(dydx)) + jnp.mean(jnp.abs(dy2))) * weight
        weight /= 2.3
    return loss


if __name__ == "__main__":
    key = jax.random.PRNGKey(0)
    k0, k1 = jax.random.split(key)

    # Single-scale input (N=2, C=4, H=16, W=16).
    x = jax.random.normal(k0, (2, 4, 16, 16), dtype=jnp.float32)
    # Multi-scale list (like a pyramid of predictions).
    x_half = jax.random.normal(k1, (2, 4, 8, 8), dtype=jnp.float32)

    loss_single = jax.block_until_ready(smooth_loss(x))
    loss_multi = jax.block_until_ready(smooth_loss([x, x_half]))

    ref_single = _ref_smooth_loss(x)
    ref_multi = _ref_smooth_loss([x, x_half])

    assert jnp.allclose(loss_single, ref_single, rtol=1e-5, atol=1e-6), (
        loss_single, ref_single)
    assert jnp.allclose(loss_multi, ref_multi, rtol=1e-5, atol=1e-6), (
        loss_multi, ref_multi)

    print("KERNEL_OK")
</pallas_src>

<mosaic_0001>
module attributes {stable_mosaic.version = 11 : i64} {
  func.func @_smooth_sums_kernel(%arg0: i32, %arg1: i32, %arg2: memref<4x16x16xf32, #tpu.memory_space<vmem>>, %arg3: memref<1x1x16xf32, #tpu.memory_space<vmem>>, %arg4: memref<1x1x16xf32, #tpu.memory_space<vmem>>, %arg5: memref<1x1x16xf32, #tpu.memory_space<vmem>>) attributes {dimension_semantics = [#tpu.dimension_semantics<parallel>, #tpu.dimension_semantics<arbitrary>], iteration_bounds = array<i64: 2, 1>, scalar_prefetch = 0 : i64, scratch_operands = 0 : i64, tpu.core_type = #tpu.core_type<tc>, window_params = [{transform_indices = @transform_0, window_bounds = array<i64: 4, 16, 16>}, {transform_indices = @transform_1, window_bounds = array<i64: 1, 1, 16>}, {transform_indices = @transform_2, window_bounds = array<i64: 1, 1, 16>}, {transform_indices = @transform_3, window_bounds = array<i64: 1, 1, 16>}]} {
    %c0_i32 = arith.constant 0 : i32
    %0 = arith.cmpi eq, %arg1, %c0_i32 : i32
    %1 = arith.extui %0 : i1 to i32
    %c0_i32_0 = arith.constant 0 : i32
    %2 = arith.cmpi ne, %1, %c0_i32_0 : i32
    scf.if %2 {
      %cst_23 = arith.constant 0.000000e+00 : f32
      %43 = vector.broadcast %cst_23 : f32 to vector<1x1x16xf32>
      %c0_24 = arith.constant 0 : index
      %c0_25 = arith.constant 0 : index
      %c0_26 = arith.constant 0 : index
      %44 = vector.load %arg3[%c0_24, %c0_25, %c0_26] : memref<1x1x16xf32, #tpu.memory_space<vmem>>, vector<1x1x16xf32>
      tpu.vector_store %arg3[%c0_24, %c0_25, %c0_26], %43 {strides = array<i32>} : memref<1x1x16xf32, #tpu.memory_space<vmem>>, vector<1x1x16xf32>,
      %cst_27 = arith.constant 0.000000e+00 : f32
      %45 = vector.broadcast %cst_27 : f32 to vector<1x1x16xf32>
      %c0_28 = arith.constant 0 : index
      %c0_29 = arith.constant 0 : index
      %c0_30 = arith.constant 0 : index
      %46 = vector.load %arg4[%c0_28, %c0_29, %c0_30] : memref<1x1x16xf32, #tpu.memory_space<vmem>>, vector<1x1x16xf32>
      tpu.vector_store %arg4[%c0_28, %c0_29, %c0_30], %45 {strides = array<i32>} : memref<1x1x16xf32, #tpu.memory_space<vmem>>, vector<1x1x16xf32>,
      %cst_31 = arith.constant 0.000000e+00 : f32
      %47 = vector.broadcast %cst_31 : f32 to vector<1x1x16xf32>
      %c0_32 = arith.constant 0 : index
      %c0_33 = arith.constant 0 : index
      %c0_34 = arith.constant 0 : index
      %48 = vector.load %arg5[%c0_32, %c0_33, %c0_34] : memref<1x1x16xf32, #tpu.memory_space<vmem>>, vector<1x1x16xf32>
      tpu.vector_store %arg5[%c0_32, %c0_33, %c0_34], %47 {strides = array<i32>} : memref<1x1x16xf32, #tpu.memory_space<vmem>>, vector<1x1x16xf32>,
    } else {
    }
    %c0 = arith.constant 0 : index
    %c0_1 = arith.constant 0 : index
    %c0_2 = arith.constant 0 : index
    %3 = vector.load %arg2[%c0, %c0_1, %c0_2] : memref<4x16x16xf32, #tpu.memory_space<vmem>>, vector<4x16x16xf32>
    %4 = vector.extract_strided_slice %3 {offsets = [0, 0, 2], sizes = [4, 16, 14], strides = [1, 1, 1]} : vector<4x16x16xf32> to vector<4x16x14xf32>
    %5 = vector.extract_strided_slice %3 {offsets = [0, 0, 1], sizes = [4, 16, 14], strides = [1, 1, 1]} : vector<4x16x16xf32> to vector<4x16x14xf32>
    %6 = arith.subf %4, %5 : vector<4x16x14xf32>
    %7 = vector.extract_strided_slice %3 {offsets = [0, 0, 1], sizes = [4, 16, 14], strides = [1, 1, 1]} : vector<4x16x16xf32> to vector<4x16x14xf32>
    %8 = vector.extract_strided_slice %3 {offsets = [0, 0, 0], sizes = [4, 16, 14], strides = [1, 1, 1]} : vector<4x16x16xf32> to vector<4x16x14xf32>
    %9 = arith.subf %7, %8 : vector<4x16x14xf32>
    %10 = arith.subf %6, %9 : vector<4x16x14xf32>
    %11 = vector.extract_strided_slice %3 {offsets = [0, 1, 1], sizes = [4, 15, 15], strides = [1, 1, 1]} : vector<4x16x16xf32> to vector<4x15x15xf32>
    %12 = vector.extract_strided_slice %3 {offsets = [0, 1, 0], sizes = [4, 15, 15], strides = [1, 1, 1]} : vector<4x16x16xf32> to vector<4x15x15xf32>
    %13 = arith.subf %11, %12 : vector<4x15x15xf32>
    %14 = vector.extract_strided_slice %3 {offsets = [0, 0, 1], sizes = [4, 15, 15], strides = [1, 1, 1]} : vector<4x16x16xf32> to vector<4x15x15xf32>
    %15 = vector.extract_strided_slice %3 {offsets = [0, 0, 0], sizes = [4, 15, 15], strides = [1, 1, 1]} : vector<4x16x16xf32> to vector<4x15x15xf32>
    %16 = arith.subf %14, %15 : vector<4x15x15xf32>
    %17 = arith.subf %13, %16 : vector<4x15x15xf32>
    %18 = vector.extract_strided_slice %3 {offsets = [0, 2, 0], sizes = [4, 14, 16], strides = [1, 1, 1]} : vector<4x16x16xf32> to vector<4x14x16xf32>
    %19 = vector.extract_strided_slice %3 {offsets = [0, 1, 0], sizes = [4, 14, 16], strides = [1, 1, 1]} : vector<4x16x16xf32> to vector<4x14x16xf32>
    %20 = arith.subf %18, %19 : vector<4x14x16xf32>
    %21 = vector.extract_strided_slice %3 {offsets = [0, 1, 0], sizes = [4, 14, 16], strides = [1, 1, 1]} : vector<4x16x16xf32> to vector<4x14x16xf32>
    %22 = vector.extract_strided_slice %3 {offsets = [0, 0, 0], sizes = [4, 14, 16], strides = [1, 1, 1]} : vector<4x16x16xf32> to vector<4x14x16xf32>
    %23 = arith.subf %21, %22 : vector<4x14x16xf32>
    %24 = arith.subf %20, %23 : vector<4x14x16xf32>
    %25 = math.absf %10 : vector<4x16x14xf32>
    %cst = arith.constant dense<0.000000e+00> : vector<14xf32>
    %26 = vector.multi_reduction <add>, %25, %cst [0, 1] : vector<4x16x14xf32> to vector<14xf32>
    %27 = vector.shape_cast %26 : vector<14xf32> to vector<1x1x14xf32>
    %28 = math.absf %17 : vector<4x15x15xf32>
    %cst_3 = arith.constant dense<0.000000e+00> : vector<15xf32>
    %29 = vector.multi_reduction <add>, %28, %cst_3 [0, 1] : vector<4x15x15xf32> to vector<15xf32>
    %30 = vector.shape_cast %29 : vector<15xf32> to vector<1x1x15xf32>
    %31 = math.absf %24 : vector<4x14x16xf32>
    %cst_4 = arith.constant dense<0.000000e+00> : vector<16xf32>
    %32 = vector.multi_reduction <add>, %31, %cst_4 [0, 1] : vector<4x14x16xf32> to vector<16xf32>
    %33 = vector.shape_cast %32 : vector<16xf32> to vector<1x1x16xf32>
    %c0_5 = arith.constant 0 : index
    %c0_6 = arith.constant 0 : index
    %c0_7 = arith.constant 0 : index
    %34 = vector.load %arg3[%c0_5, %c0_6, %c0_7] : memref<1x1x16xf32, #tpu.memory_space<vmem>>, vector<1x1x14xf32>
    %35 = arith.addf %34, %27 : vector<1x1x14xf32>
    %c0_8 = arith.constant 0 : index
    %c0_9 = arith.constant 0 : index
    %c0_10 = arith.constant 0 : index
    %36 = vector.load %arg3[%c0_8, %c0_9, %c0_10] : memref<1x1x16xf32, #tpu.memory_space<vmem>>, vector<1x1x14xf32>
    tpu.vector_store %arg3[%c0_8, %c0_9, %c0_10], %35 {strides = array<i32>} : memref<1x1x16xf32, #tpu.memory_space<vmem>>, vector<1x1x14xf32>,
    %c0_11 = arith.constant 0 : index
    %c0_12 = arith.constant 0 : index
    %c0_13 = arith.constant 0 : index
    %37 = vector.load %arg4[%c0_11, %c0_12, %c0_13] : memref<1x1x16xf32, #tpu.memory_space<vmem>>, vector<1x1x15xf32>
    %38 = arith.addf %37, %30 : vector<1x1x15xf32>
    %c0_14 = arith.constant 0 : index
    %c0_15 = arith.constant 0 : index
    %c0_16 = arith.constant 0 : index
    %39 = vector.load %arg4[%c0_14, %c0_15, %c0_16] : memref<1x1x16xf32, #tpu.memory_space<vmem>>, vector<1x1x15xf32>
    tpu.vector_store %arg4[%c0_14, %c0_15, %c0_16], %38 {strides = array<i32>} : memref<1x1x16xf32, #tpu.memory_space<vmem>>, vector<1x1x15xf32>,
    %c0_17 = arith.constant 0 : index
    %c0_18 = arith.constant 0 : index
    %c0_19 = arith.constant 0 : index
    %40 = vector.load %arg5[%c0_17, %c0_18, %c0_19] : memref<1x1x16xf32, #tpu.memory_space<vmem>>, vector<1x1x16xf32>
    %41 = arith.addf %40, %33 : vector<1x1x16xf32>
    %c0_20 = arith.constant 0 : index
    %c0_21 = arith.constant 0 : index
    %c0_22 = arith.constant 0 : index
    %42 = vector.load %arg5[%c0_20, %c0_21, %c0_22] : memref<1x1x16xf32, #tpu.memory_space<vmem>>, vector<1x1x16xf32>
    tpu.vector_store %arg5[%c0_20, %c0_21, %c0_22], %41 {strides = array<i32>} : memref<1x1x16xf32, #tpu.memory_space<vmem>>, vector<1x1x16xf32>,
    return
  }
  func.func @transform_0(%arg0: i32, %arg1: i32) -> (i32, i32, i32) {
    %c1_i32 = arith.constant 1 : i32
    %0 = arith.muli %arg0, %c1_i32 : i32
    %1 = arith.addi %0, %arg1 : i32
    %c0_i32 = arith.constant 0 : i32
    %c0_i32_0 = arith.constant 0 : i32
    %c0_i32_1 = arith.constant 0 : i32
    return %1, %c0_i32, %c0_i32_0 : i32, i32, i32
  }
  func.func @transform_1(%arg0: i32, %arg1: i32) -> (i32, i32, i32) {
    %c0_i32 = arith.constant 0 : i32
    %c0_i32_0 = arith.constant 0 : i32
    %c0_i32_1 = arith.constant 0 : i32
    return %arg0, %c0_i32, %c0_i32_0 : i32, i32, i32
  }
  func.func @transform_2(%arg0: i32, %arg1: i32) -> (i32, i32, i32) {
    %c0_i32 = arith.constant 0 : i32
    %c0_i32_0 = arith.constant 0 : i32
    %c0_i32_1 = arith.constant 0 : i32
    return %arg0, %c0_i32, %c0_i32_0 : i32, i32, i32
  }
  func.func @transform_3(%arg0: i32, %arg1: i32) -> (i32, i32, i32) {
    %c0_i32 = arith.constant 0 : i32
    %c0_i32_0 = arith.constant 0 : i32
    %c0_i32_1 = arith.constant 0 : i32
    return %arg0, %c0_i32, %c0_i32_0 : i32, i32, i32
  }
}

</mosaic_0001>

<bundles_post_ra>
// kernel: tpu_custom_call.1
= control target key start
LH: loop header
LB: loop body
LE: loop exit
PB: predicated region body
PF: predicated region fallthrough
CT: control target
= control target key end

     0   :  { %9 = vsyncpa [#allocation3], 0  ;;  %s1471_s0 = inlined_call_operand.hbm [shape: f32[8,16,16], index: 0, kind: input, shape index: {}]   ;;  %s1472_s1 = inlined_call_operand.hbm [shape: f32[2,1,16], index: 1, kind: output, shape index: {0}]   ;;  %s1473_s2 = inlined_call_operand.hbm [shape: f32[2,1,16], index: 2, kind: output, shape index: {1}]   ;;  %s1474_s3 = inlined_call_operand.hbm [shape: f32[2,1,16], index: 3, kind: output, shape index: {2}]  }
   0x1   :  { %11 = vsyncpa [#allocation3 + $0x1], 0 }
   0x2   :  { %12 = vsyncpa [#allocation4], 0 }
   0x3   :  { %14 = vsyncpa [#allocation4 + $0x1], 0 }
   0x4   :  { %15 = vsyncpa [#allocation7], 0 }
   0x5   :  { %17 = vsyncpa [#allocation7 + $0x1], 0  ;;  %s1077_s12 = smov 0   ;;  %s1079_s13 = smov 0  }
   0x6   :  { %s1081_s14 = smov 0   ;;  %s1083_s15 = smov 0  }
   0x7   :  { %s1085_s16 = smov 0   ;;  %s1087_s17 = smov 0  }
   0x8 LB: > { %s1108_s18 = sadd.s32 4294967295, %s1044_s17   ;;  %s785_s19 = sadd.s32 4294967294, %s1044_s17   ;;  %s1044_s17 = sphi %s1087_s17, %s23_s17   ;;  %s1040_s16 = sphi %s1085_s16, %s1485_s16   ;;  %s1036_s15 = sphi %s1083_s15, %s1484_s15   ;;  %s1032_s14 = sphi %s1081_s14, %s1483_s14   ;;  %s1028_s13 = sphi %s1079_s13, %s1482_s13   ;;  %s1024_s12 = sphi %s1077_s12, %s1481_s12  }
   0x9   : > { %s35_s20 = sadd.s32 1, %s1040_s16  ;;  %s44_s21 = sadd.s32 1, %s1032_s14 }
   0xa   : > { %p37_p0 = scmp.ge.s32.totalorder %s35_s20, 2  ;;  %p51_p1 = scmp.ne.s32.totalorder %s1032_s14, %s1028_s13 }
   0xb   : > { %p52_p2 = scmp.eq.s32.totalorder %s1044_s17, 0  ;;  %p57_p3 = scmp.ne.s32.totalorder %s1028_s13, %s1024_s12 }
   0xc   : > { %s1487_s20 = smov (%p37_p0, %s35_s20), 0  ;;  %p58_p5 = scmp.eq.s32.totalorder %s1108_s18, 0 }
   0xd   : > { %p1120_p4 = por %p52_p2, %p51_p1  ;;  %s41_s23 = ssub.s32 %s1040_s16, %s1487_s20 }
   0xe   : > { %p81_p6 = scmp.eq.s32.totalorder %s1108_s18, 1  ;;  %p42_p7 = scmp.eq.s32.totalorder %s41_s23, 0 }
   0xf   : > { %p1128_p8 = por %p58_p5, %p57_p3  ;;  %p87_p10 = scmp.eq.s32.totalorder %s785_s19, 1 }
  0x10   : > { %p1132_p9 = por %p81_p6, %p51_p1  ;;  %p823_p13 = scmp.lt.s32.totalorder %s1044_s17, 2 }
  0x11   : > { %s1139_s26 = scalar_select %p42_p7, %s1032_s14, %s44_s21  }
  0x12   : > { %p1141_p11 = por %p87_p10, %p57_p3  ;;  %s159_s28 = sand.u32 1, %s1032_s14  }
  0x13   : > { %s788_s29 = sshll.u32 %s159_s28, 6  ;;  %s800_s30 = sshll.u32 %s1040_s16, 10 }
  0x14   : > { %s171_s6 = scalar_lea.hbm %s1471_s0, %s800_s30  ;;  %s163_s7 = scalar_lea.vmem [#allocation2], %s788_s29 }
  0x15   : > { %s172_s8 = sshll.u32 %s163_s7, 4  ;;  %p1154_p0 = pnand %p823_p13, %p1120_p4  ;;  %s173_s8 = int_to_ptr.vmem [resolvable:$true] %s172_s8 }
  0x16   : > { %p792_p1 = scmp.ge.s32.totalorder %s1044_s17, 1  ;;  %s160_s10 = scalar_lea.sflag [#allocation3], %s159_s28 }
  0x17   : > { %p882_p2 = pneg %p1154_p0  ;;  %s893_s11 = scalar_lea.vmem %s173_s8, 1024 }
  0x18   : > { %p894_p3 = scmp.ne.s32.totalorder %s173_s8, %s893_s11  ;;  %s1046_s21 = smov [#allocation2]  }
  0x19   : > { %s898_s23 = sshll.u32 %s1046_s21, 4  ;;  %s899_s23 = int_to_ptr.vmem [resolvable:$false] %s898_s23 }
  0x1a   : > { %p896_p5 = pnand %p894_p3, %p882_p2  ;;  %s900_s29 = scalar_lea.vmem %s899_s23, 2048 }
  0x1b   : > { %p901_p7 = scmp.lt.s32.totalorder %s173_s8, %s899_s23  ;;  %p902_p10 = scmp.lt.s32.totalorder %s900_s29, %s893_s11 }
  0x1c   : > { %p897_p6 = pneg %p896_p5 }
  0x1d   : > { %p903_p12 = por %p902_p10, %p901_p7 }
  0x1f   : > { %p904_p4 = pnand %p903_p12, %p897_p6 }
  0x21   : > { %907 = shalt.err (!%p904_p4)
}
  0x22   : > { %s1047_s22 = smov 128   ;;  %s1048_s28 = smov 8  }
  0x23   : > { %812 = dma.hbm_to_vmem [thread:$0]  (!%p1154_p0), %s171_s6, 1024, %s173_s8, %s160_s10, %s1047_s22, %s1047_s22, %s1048_s28  }
  0x24   : > { %p180_p13 = scmp.lt.s32.totalorder %s1044_s17, 3 }
  0x26   : > { %p181_p2 = pnand %p792_p1, %p180_p13 }
  0x27   : > { %s1167_s30 = sand.u32 (!%p181_p2), 1, %s1028_s13  }
  0x28   : > { %184 = sbr.rel (%p181_p2) target bundleno = 448 (0x1c0), region = 24  ;;  %s793_s4 = sshll.u32 (!%p181_p2), %s1167_s30, 6 }
  0x29   : > { %s187_s5 = scalar_lea.sflag (!%p181_p2), [#allocation3], %s1167_s30  ;;  %s190_s7 = scalar_lea.vmem (!%p181_p2), [#allocation2], %s793_s4 }
  0x2d   : > { %1011 = dma.done.wait (%p1128_p8), %s187_s5, 1024  }
  0x2e   : > { %1013 = vsyncadd (%p1128_p8), %s187_s5, 4294966272  ;;  %v1175_v0 = vld [vmem:[%s190_s7 + $0x10] sm:$0xff]  ;;  %v1177_v1 = vld [vmem:[%s190_s7] sm:$0xff]  ;;  %s1049_s6 = smov 1   ;;  %vm318_vm0 = vcmask 1040384   ;;  %vm457_vm1 = vcmask 1046528  }
  0x2f   : > { %250 = vrot.lane.b32.xlu1 %v1175_v0, %s1049_s6  ;;  %246 = vrot.lane.b32.xlu0 %v1177_v1, %s1049_s6  ;;  %v1183_v2 = vld [vmem:[%s190_s7 + $0x18] sm:$0xff]  ;;  %v1185_v3 = vld [vmem:[%s190_s7 + $0x8] sm:$0xff]  ;;  %vm478_vm2 = vcmask 130056   ;;  %vm480_vm3 = vcmask 129032   ;;  %vm226_vm4 = vcmask 122880   ;;  %s1280_s24 = scalar_lea.vmem [#allocation6], %s1167_s30 }
  0x30   : > { %v1191_v4 = vld [vmem:[%s190_s7 + $0x28] sm:$0xff]  ;;  %v1193_v5 = vld [vmem:[%s190_s7 + $0x20] sm:$0xff]  ;;  %v1199_v6 = vld [vmem:[%s190_s7 + $0x38] sm:$0xff]  ;;  %s1286_s8 = scalar_lea.vmem [#allocation5], %s1167_s30  ;;  %s1052_s9 = smov 127   ;;  %vm517_vm5 = vcmask 1045504  }
  0x31   : > { %v1201_v7 = vld [vmem:[%s190_s7 + $0x30] sm:$0xff]  ;;  %vm538_vm6 = vcmask 130048   ;;  %vm540_vm7 = vcmask 128000   ;;  %vm419_vm8 = vcmask 130064   ;;  %s1348_s10 = scalar_lea.vmem [#allocation8], %s1167_s30  ;;  %s1053_s11 = smov 126  }
  0x32   : > { %s613_s21 = sand.u32 1, %s1108_s18   ;;  %s1361_s23 = sshll.u32 %s1036_s15, 4  ;;  %vm603_vm9 = vcmask 114688  }
  0x33   : > { %252 = vrot.lane.b32.xlu1 %v1183_v2, %s1049_s6  ;;  %248 = vrot.lane.b32.xlu0 %v1185_v3, %s1049_s6  ;;  %s643_s29 = sshll.u32 %s1280_s24, 4  ;;  %s656_s22 = sshll.u32 %s1348_s10, 4  ;;  %s1371_s29 = int_to_ptr.vmem [resolvable:$true] %s643_s29  ;;  %s1379_s22 = int_to_ptr.vmem [resolvable:$true] %s656_s22 }
  0x34   : > { %s1369_s5 = scalar_lea.hbm %s1473_s2, %s1361_s23  ;;  %s1377_s15 = scalar_lea.hbm %s1474_s3, %s1361_s23 }
  0x37   : > { %256 = vrot.lane.b32.xlu1 %v1191_v4, %s1049_s6  ;;  %254 = vrot.lane.b32.xlu0 %v1193_v5, %s1049_s6 }
  0x3b   : > { %260 = vrot.lane.b32.xlu1 %v1199_v6, %s1049_s6  ;;  %258 = vrot.lane.b32.xlu0 %v1201_v7, %s1049_s6 }
  0xa1   : > { %v251_v8 = vpop.permute.xlu1 %250  ;;  %v247_v9 = vpop.permute.xlu0 %246 }
  0xa2   : > { %v1208_v10 = vsub.f32 %v1175_v0, %v251_v8  ;;  %v1211_v11 = vsub.f32 %v1177_v1, %v247_v9 }
  0xa4   : > { %v322_v12 = vrot.slane %v1208_v10, 7  ;;  %v319_v13 = vrot.slane %v1211_v11, 7  ;;  %286 = vrot.lane.b32.xlu0 %v1211_v11, %s1049_s6 }
  0xa5   : > { %v253_v14 = vpop.permute.xlu1 %252  ;;  %v249_v15 = vpop.permute.xlu0 %248 }
  0xa6   : > { %v341_v16 = vsub.f32 %v1208_v10, %v322_v12  ;;  %v339_v17 = vsub.f32 %v1211_v11, %v319_v13  ;;  %v1220_v18 = vsub.f32 %v1183_v2, %v253_v14  ;;  %v1223_v19 = vsub.f32 %v1185_v3, %v249_v15 }
  0xa8   : > { %v323_v20 = vrot.slane %v1220_v18, 7  ;;  %v320_v21 = vrot.slane %v1223_v19, 7  ;;  %290 = vrot.lane.b32.xlu0 %v1208_v10, %s1049_s6  ;;  %288 = vrot.lane.b32.xlu1 %v1223_v19, %s1049_s6  ;;  %v443_v24 = vand.u32 2147483647, %v341_v16  ;;  %v441_v25 = vand.u32 2147483647, %v339_v17 }
  0xa9   : > { %v257_v22 = vpop.permute.xlu1 %256  ;;  %v255_v23 = vpop.permute.xlu0 %254 }
  0xaa   : > { %v324_v26 = vsel %vm318_vm0, %v322_v12, %v323_v20  ;;  %v321_v27 = vsel %vm318_vm0, %v319_v13, %v320_v21  ;;  %v1236_v30 = vsub.f32 %v1191_v4, %v257_v22  ;;  %v1239_v31 = vsub.f32 %v1193_v5, %v255_v23 }
  0xab   : > { %v342_v28 = vsub.f32 %v1220_v18, %v324_v26  ;;  %v340_v29 = vsub.f32 %v1223_v19, %v321_v27  ;;  %v461_v38 = vrot.slane %v443_v24, 1  ;;  %v458_v39 = vrot.slane %v441_v25, 1 }
  0xac   : > { %292 = vrot.lane.b32.xlu1 %v1220_v18, %s1049_s6  ;;  %v326_v34 = vrot.slane %v1236_v30, 7  ;;  %v325_v35 = vrot.slane %v1239_v31, 7  ;;  %294 = vrot.lane.b32.xlu0 %v1239_v31, %s1049_s6  ;;  %v1050_v26 = vmov 0.0  }
  0xad   : > { %v444_v32 = vand.u32 2147483647, %v342_v28  ;;  %v442_v33 = vand.u32 2147483647, %v340_v29  ;;  %v261_v36 = vpop.permute.xlu1 %260  ;;  %v259_v37 = vpop.permute.xlu0 %258  ;;  %228 = vst.msk [vmem:[%s1280_s24] sm:$0x1] %vm226_vm4, %v1050_v26 }
  0xae   : > { %v1248_v40 = vsub.f32 %v1199_v6, %v261_v36  ;;  %v1251_v41 = vsub.f32 %v1201_v7, %v259_v37  ;;  %v327_v44 = vsel %vm318_vm0, %v325_v35, %v326_v34  ;;  %v343_v45 = vsub.f32 %v1239_v31, %v325_v35  ;;  %227 = vst.msk [vmem:[%s1286_s8] sm:$0x1] %vm226_vm4, %v1050_v26 }
  0xaf   : > { %v462_v42 = vrot.slane %v444_v32, 1  ;;  %v459_v43 = vrot.slane %v442_v33, 1  ;;  %v344_v46 = vsub.f32 %v1236_v30, %v327_v44  ;;  %v1051_v29 = vmov 1966171168   ;;  %229 = vst.msk [vmem:[%s1348_s10] sm:$0x1] %vm226_vm4, %v1050_v26 }
  0xb0   : > { %v329_v47 = vrot.slane %v1248_v40, 7  ;;  %v328_v48 = vrot.slane %v1251_v41, 7  ;;  %296 = vrot.lane.b32.xlu1 %v1236_v30, %s1049_s6  ;;  %298 = vrot.lane.b32.xlu0 %v1251_v41, %s1049_s6  ;;  %v445_v53 = vand.u32 2147483647, %v343_v45  ;;  %v564_v32 = vunpack.c.l.s4 %v1051_v29 }
  0xb1   : > { %v463_v49 = vsel %vm457_vm1, %v461_v38, %v462_v42  ;;  %v460_v50 = vsel %vm457_vm1, %v458_v39, %v459_v43  ;;  %v481_v51 = vsel %vm480_vm3, %v459_v43, 0.0  ;;  %v446_v54 = vand.u32 2147483647, %v344_v46 }
  0xb2   : > { %v479_v52 = vsel %vm478_vm2, %v460_v50, 0.0  ;;  %v330_v56 = vsel %vm318_vm0, %v328_v48, %v329_v47  ;;  %v345_v57 = vsub.f32 %v1251_v41, %v328_v48  ;;  %v483_v58 = vsel %vm478_vm2, %v463_v49, 0.0 }
  0xb3   : > { %v482_v55 = vadd.f32 %v481_v51, %v479_v52  ;;  %v464_v59 = vrot.slane %v445_v53, 1  ;;  %v465_v60 = vrot.slane %v446_v54, 1  ;;  %v346_v61 = vsub.f32 %v1248_v40, %v330_v56 }
  0xb4   : > { %300 = vrot.lane.b32.xlu1 %v1248_v40, %s1049_s6  ;;  %v447_v63 = vand.u32 2147483647, %v345_v57  ;;  %v485_v8 = vsel %vm480_vm3, %v462_v42, 0.0  ;;  %v566_v33 = vlaneseq  ;;  %v565_v36 = vunpack.c.0.s8 %v564_v32  ;;  %s1382_s6 = scalar_lea.sflag [#allocation7], %s613_s21 }
  0xb5   : > { %v484_v62 = vadd.f32 %v483_v58, %v482_v55  ;;  %v466_v9 = vsel %vm457_vm1, %v464_v59, %v465_v60  ;;  %v448_v12 = vand.u32 2147483647, %v346_v61  ;;  %v489_v20 = vsel %vm480_vm3, %v465_v60, 0.0 }
  0xb6   : > { %v467_v14 = vrot.slane %v447_v63, 1  ;;  %v487_v15 = vsel %vm478_vm2, %v466_v9, 0.0  ;;  %v567_v37 = vshrl.u32 %v566_v33, 7  ;;  %v347_v46 = vrot.slane %v1177_v1, 7 }
  0xb7   : > { %v486_v13 = vadd.f32 %v485_v8, %v484_v62  ;;  %v468_v16 = vrot.slane %v448_v12, 1  ;;  %v348_v47 = vrot.slane %v1185_v3, 7  ;;  %v350_v48 = vrot.slane %v1175_v0, 7 }
  0xb8   : > { %v1291_v42 = vsub.s32 %v565_v36, %v567_v37  ;;  %v351_v49 = vrot.slane %v1183_v2, 7  ;;  %v367_v51 = vsub.f32 %v1177_v1, %v347_v46  ;;  %v354_v58 = vrot.slane %v1191_v4, 7 }
  0xb9   : > { %v488_v17 = vadd.f32 %v487_v15, %v486_v13  ;;  %v469_v21 = vsel %vm457_vm1, %v467_v14, %v468_v16  ;;  %v493_v25 = vsel %vm480_vm3, %v468_v16, 0.0  ;;  %v349_v50 = vsel %vm318_vm0, %v347_v46, %v348_v47 }
  0xba   : > { %v491_v23 = vsel %vm478_vm2, %v469_v21, 0.0  ;;  %v368_v52 = vsub.f32 %v1185_v3, %v349_v50  ;;  %v352_v53 = vsel %vm318_vm0, %v350_v48, %v351_v49  ;;  %v369_v54 = vsub.f32 %v1175_v0, %v350_v48 }
  0xbb   : > { %v490_v22 = vadd.f32 %v489_v20, %v488_v17  ;;  %v383_v55 = vrot.slane %v367_v51, 7  ;;  %v370_v56 = vsub.f32 %v1183_v2, %v352_v53  ;;  %v353_v59 = vrot.slane %v1193_v5, 7 }
  0xbc   : > { %v384_v57 = vrot.slane %v368_v52, 7  ;;  %v386_v60 = vrot.slane %v369_v54, 7  ;;  %v357_v2 = vrot.slane %v1199_v6, 7  ;;  %v356_v12 = vrot.slane %v1201_v7, 7 }
  0xbd   : > { %v492_v24 = vadd.f32 %v491_v23, %v490_v22  ;;  %v387_v61 = vrot.slane %v370_v56, 7  ;;  %v355_v1 = vsel %vm318_vm0, %v353_v59, %v354_v58  ;;  %v403_v63 = vsub.f32 %v367_v51, %v383_v55 }
  0xbe   : > { %v385_v62 = vsel %vm318_vm0, %v383_v55, %v384_v57  ;;  %v371_v0 = vsub.f32 %v1193_v5, %v353_v59  ;;  %v372_v9 = vsub.f32 %v1191_v4, %v355_v1  ;;  %v405_v13 = vsub.f32 %v369_v54, %v386_v60 }
  0xbf   : > { %v494_v27 = vadd.f32 %v493_v25, %v492_v24  ;;  %v404_v3 = vsub.f32 %v368_v52, %v385_v62  ;;  %v388_v8 = vsel %vm318_vm0, %v386_v60, %v387_v61  ;;  %v501_v14 = vand.u32 2147483647, %v403_v63 }
  0xc0   : > { %v406_v15 = vsub.f32 %v370_v56, %v388_v8  ;;  %v389_v17 = vrot.slane %v371_v0, 7  ;;  %v390_v20 = vrot.slane %v372_v9, 7  ;;  %v358_v21 = vsel %vm318_vm0, %v356_v12, %v357_v2 }
  0xc1   : > { %v495_v28 = vrot.slane %v494_v27, 4  ;;  %v502_v16 = vand.u32 2147483647, %v404_v3  ;;  %v503_v22 = vand.u32 2147483647, %v405_v13  ;;  %v518_v23 = vrot.slane %v501_v14, 2 }
  0xc2   : > { %v504_v24 = vand.u32 2147483647, %v406_v15  ;;  %v391_v5 = vsel %vm318_vm0, %v389_v17, %v390_v20  ;;  %v373_v4 = vsub.f32 %v1201_v7, %v356_v12 }
  0xc3   : > { %v496_v34 = vadd.f32 %v495_v28, %v494_v27  ;;  %v519_v25 = vrot.slane %v502_v16, 2  ;;  %v374_v27 = vsub.f32 %v1199_v6, %v358_v21  ;;  %v407_v28 = vsub.f32 %v371_v0, %v389_v17 }
  0xc4   : > { %v521_v29 = vrot.slane %v503_v22, 2  ;;  %v522_v32 = vrot.slane %v504_v24, 2 }
  0xc5   : > { %v497_v35 = vrot.slane %v496_v34, 2  ;;  %v520_v33 = vsel %vm517_vm5, %v518_v23, %v519_v25  ;;  %v393_v36 = vrot.slane %v374_v27, 7 }
  0xc6   : > { %v539_v37 = vsel %vm538_vm6, %v520_v33, 0.0  ;;  %v545_v51 = vsel %vm540_vm7, %v522_v32, 0.0 }
  0xc7   : > { %v498_v38 = vadd.f32 %v497_v35, %v496_v34  ;;  %v408_v34 = vsub.f32 %v372_v9, %v391_v5  ;;  %v392_v35 = vrot.slane %v373_v4, 7 }
  0xc9   : > { %v499_v39 = vrot.slane %v498_v38, 1  ;;  %v506_v7 = vand.u32 2147483647, %v408_v34  ;;  %v394_v6 = vsel %vm318_vm0, %v392_v35, %v393_v36  ;;  %v409_v48 = vsub.f32 %v373_v4, %v392_v35 }
  0xca   : > { %v410_v49 = vsub.f32 %v374_v27, %v394_v6 }
  0xcb   : > { %v500_v43 = vadd.f32 %v499_v39, %v498_v38  ;;  %v541_v38 = vsel %vm540_vm7, %v519_v25, 0.0  ;;  %v523_v39 = vsel %vm517_vm5, %v521_v29, %v522_v32  ;;  %v525_v47 = vrot.slane %v506_v7, 2 }
  0xcc   : > { %v507_v53 = vand.u32 2147483647, %v409_v48  ;;  %v508_v54 = vand.u32 2147483647, %v410_v49 }
  0xcd   : > { %v591_v44 = vrot.slane %v500_v43, %v1291_v42  ;;  %v505_v43 = vand.u32 2147483647, %v407_v28  ;;  %v549_v60 = vsel %vm540_vm7, %v525_v47, 0.0 }
  0xce   : > { %v527_v57 = vrot.slane %v507_v53, 2  ;;  %v528_v58 = vrot.slane %v508_v54, 2  ;;  %v605_v53 = vld [vmem:[%s1348_s10] sm:$0x1] }
  0xcf   : > { %v598_v45 = vrot.slane %v591_v44, %v1291_v42  ;;  %v542_v44 = vadd.f32 %v541_v38, %v539_v37  ;;  %v524_v46 = vrot.slane %v505_v43, 2 }
  0xd0   : > { %v529_v61 = vsel %vm517_vm5, %v527_v57, %v528_v58  ;;  %v553_v0 = vsel %vm540_vm7, %v528_v58, 0.0 }
  0xd1   : > { %599 = vrot.lane.b32.xlu0 %v598_v45, %s1052_s9  ;;  %v543_v45 = vsel %vm538_vm6, %v523_v39, 0.0  ;;  %v526_v52 = vsel %vm517_vm5, %v524_v46, %v525_v47  ;;  %v551_v1 = vsel %vm538_vm6, %v529_v61, 0.0  ;;  %s908_s9 = scalar_lea.vmem %s1371_s29, 16 }
  0xd2   : > { %v544_v50 = vadd.f32 %v543_v45, %v542_v44  ;;  %v547_v56 = vsel %vm538_vm6, %v526_v52, 0.0  ;;  %p909_p8 = scmp.ne.s32.totalorder %s1371_s29, %s908_s9 }
  0xd4   : > { %v546_v55 = vadd.f32 %v545_v51, %v544_v50  ;;  %p910_p12 = pnand %p909_p8, %p1132_p9 }
  0xd6   : > { %v548_v59 = vadd.f32 %v547_v56, %v546_v55  ;;  %p911_p0 = pneg %p910_p12 }
  0xd8   : > { %v550_v62 = vadd.f32 %v549_v60, %v548_v59  ;;  %v583_v59 = vld [vmem:[%s1280_s24] sm:$0x1] }
  0xda   : > { %v552_v3 = vadd.f32 %v551_v1, %v550_v62 }
  0xdc   : > { %v554_v12 = vadd.f32 %v553_v0, %v552_v3 }
  0xde   : > { %v555_v21 = vrot.slane %v554_v12, 4 }
  0xe0   : > { %v556_v29 = vadd.f32 %v555_v21, %v554_v12 }
  0xe2   : > { %v557_v43 = vrot.slane %v556_v29, 2 }
  0xe4   : > { %v558_v47 = vadd.f32 %v557_v43, %v556_v29 }
 0x116   : > { %v287_v63 = vpop.permute.xlu0 %286 }
 0x117   : > { %v310_v8 = vsub.f32 %v1211_v11, %v287_v63 }
 0x119   : > { %v411_v13 = vand.u32 2147483647, %v310_v8 }
 0x11a   : > { %v289_v9 = vpop.permute.xlu1 %288  ;;  %v291_v2 = vpop.permute.xlu0 %290 }
 0x11b   : > { %v311_v14 = vsub.f32 %v1223_v19, %v289_v9  ;;  %v312_v15 = vsub.f32 %v1208_v10, %v291_v2  ;;  %v420_v22 = vsel %vm419_vm8, %v411_v13, 0.0 }
 0x11d   : > { %v412_v16 = vand.u32 2147483647, %v311_v14  ;;  %v413_v17 = vand.u32 2147483647, %v312_v15 }
 0x11e   : > { %v293_v20 = vpop.permute.xlu1 %292  ;;  %v295_v24 = vpop.permute.xlu0 %294 }
 0x11f   : > { %v421_v23 = vsel %vm419_vm8, %v412_v16, 0.0  ;;  %v313_v11 = vsub.f32 %v1220_v18, %v293_v20  ;;  %v314_v5 = vsub.f32 %v1239_v31, %v295_v24  ;;  %v423_v4 = vsel %vm419_vm8, %v413_v17, 0.0 }
 0x120   : > { %v422_v25 = vadd.f32 %v421_v23, %v420_v22 }
 0x121   : > { %v414_v19 = vand.u32 2147483647, %v313_v11  ;;  %v415_v10 = vand.u32 2147483647, %v314_v5 }
 0x122   : > { %v424_v27 = vadd.f32 %v423_v4, %v422_v25  ;;  %v297_v28 = vpop.permute.xlu1 %296  ;;  %v299_v34 = vpop.permute.xlu0 %298 }
 0x123   : > { %v425_v32 = vsel %vm419_vm8, %v414_v19, 0.0  ;;  %v315_v33 = vsub.f32 %v1236_v30, %v297_v28  ;;  %v316_v18 = vsub.f32 %v1251_v41, %v299_v34  ;;  %v427_v36 = vsel %vm419_vm8, %v415_v10, 0.0 }
 0x124   : > { %v426_v35 = vadd.f32 %v425_v32, %v424_v27 }
 0x125   : > { %v416_v37 = vand.u32 2147483647, %v315_v33  ;;  %v417_v38 = vand.u32 2147483647, %v316_v18 }
 0x126   : > { %v428_v31 = vadd.f32 %v427_v36, %v426_v35  ;;  %v301_v39 = vpop.permute.xlu1 %300 }
 0x127   : > { %v429_v7 = vsel %vm419_vm8, %v416_v37, 0.0  ;;  %v317_v6 = vsub.f32 %v1248_v40, %v301_v39  ;;  %v431_v45 = vsel %vm419_vm8, %v417_v38, 0.0  ;;  %v559_v40 = vrot.slane %v558_v47, 1 }
 0x128   : > { %v430_v44 = vadd.f32 %v429_v7, %v428_v31 }
 0x129   : > { %v418_v30 = vand.u32 2147483647, %v317_v6  ;;  %v560_v51 = vadd.f32 %v559_v40, %v558_v47 }
 0x12a   : > { %v432_v46 = vadd.f32 %v431_v45, %v430_v44 }
 0x12b   : > { %v433_v48 = vsel %vm419_vm8, %v418_v30, 0.0  ;;  %v606_v54 = vadd.f32 %v605_v53, %v560_v51 }
 0x12c   : > { %v434_v41 = vadd.f32 %v433_v48, %v432_v46 }
 0x12d   : > { %608 = vst.msk [vmem:[%s1348_s10] sm:$0x1] %vm226_vm4, %v606_v54  ;;  %s1054_s10 = smov [#allocation6]  }
 0x12e   : > { %v435_v49 = vrot.slane %v434_v41, 4 }
 0x130   : > { %v436_v50 = vadd.f32 %v435_v49, %v434_v41 }
 0x132   : > { %v437_v52 = vrot.slane %v436_v50, 2 }
 0x134   : > { %v438_v55 = vadd.f32 %v437_v52, %v436_v50 }
 0x136   : > { %v439_v56 = vrot.slane %v438_v55, 1 }
 0x138   : > { %v440_v57 = vadd.f32 %v439_v56, %v438_v55 }
 0x13a   : > { %v569_v26 = vrot.slane %v440_v57, %v1291_v42 }
 0x13c   : > { %v576_v58 = vrot.slane %v569_v26, %v1291_v42 }
 0x13e   : > { %577 = vrot.lane.b32.xlu1 %v576_v58, %s1053_s11  ;;  %s912_s11 = sshll.u32 %s1054_s10, 4  ;;  %s913_s11 = int_to_ptr.vmem [resolvable:$false] %s912_s11 }
 0x13f   : > { %s914_s28 = scalar_lea.vmem %s913_s11, 32  ;;  %p915_p1 = scmp.lt.s32.totalorder %s1371_s29, %s913_s11 }
 0x140   : > { %p916_p3 = scmp.lt.s32.totalorder %s914_s28, %s908_s9 }
 0x142   : > { %p917_p5 = por %p916_p3, %p915_p1 }
 0x143   : > { %v600_v60 = vpop.permute.xlu0 %599 }
 0x144   : > { %v602_v61 = vadd.f32 %v600_v60, %v583_v59  ;;  %p918_p6 = pnand %p917_p5, %p911_p0 }
 0x146   : > { %604 = vst.msk [vmem:[%s1280_s24] sm:$0x1] %vm603_vm9, %v602_v61 }
 0x147   : > { %921 = shalt.err (!%p918_p6)
}
 0x148   : > { %s922_s24 = scalar_lea.hbm %s1369_s5, 16  ;;  %s926_s7 = scalar_lea.hbm %s1473_s2, 32 }
 0x149   : > { %p923_p7 = scmp.ne.s32.totalorder %s1369_s5, %s922_s24  ;;  %p927_p13 = scmp.lt.s32.totalorder %s1369_s5, %s1473_s2 }
 0x14a   : > { %p928_p2 = scmp.lt.s32.totalorder %s926_s7, %s922_s24 }
 0x14b   : > { %p924_p10 = pnand %p923_p7, %p1132_p9 }
 0x14c   : > { %p929_p8 = por %p928_p2, %p927_p13 }
 0x14d   : > { %p925_p4 = pneg %p924_p10 }
 0x14f   : > { %p930_p12 = pnand %p929_p8, %p925_p4 }
 0x151   : > { %933 = shalt.err (!%p930_p12)
}
 0x152   : > { %804 = dma.vmem_to_hbm [thread:$0]  (%p1132_p9), %s1371_s29, 16, %s1369_s5, %s1382_s6  }
 0x153   : > { %s934_s9 = scalar_lea.vmem %s1379_s22, 16  ;;  %s1055_s11 = smov [#allocation8]  }
 0x154   : > { %p935_p0 = scmp.ne.s32.totalorder %s1379_s22, %s934_s9  ;;  %s938_s28 = sshll.u32 %s1055_s11, 4  ;;  %s939_s28 = int_to_ptr.vmem [resolvable:$false] %s938_s28 }
 0x155   : > { %s940_s24 = scalar_lea.vmem %s939_s28, 32  ;;  %p941_p5 = scmp.lt.s32.totalorder %s1379_s22, %s939_s28 }
 0x156   : > { %p936_p1 = pnand %p935_p0, %p1132_p9  ;;  %p942_p6 = scmp.lt.s32.totalorder %s940_s24, %s934_s9 }
 0x158   : > { %p937_p3 = pneg %p936_p1  ;;  %p943_p7 = por %p942_p6, %p941_p5 }
 0x15a   : > { %p944_p10 = pnand %p943_p7, %p937_p3 }
 0x15c   : > { %947 = shalt.err (!%p944_p10)
}
 0x15d   : > { %s948_s21 = scalar_lea.hbm %s1377_s15, 16  ;;  %s952_s4 = scalar_lea.hbm %s1474_s3, 32 }
 0x15e   : > { %p949_p4 = scmp.ne.s32.totalorder %s1377_s15, %s948_s21  ;;  %p953_p8 = scmp.lt.s32.totalorder %s1377_s15, %s1474_s3 }
 0x15f   : > { %p954_p12 = scmp.lt.s32.totalorder %s952_s4, %s948_s21 }
 0x160   : > { %p950_p13 = pnand %p949_p4, %p1132_p9 }
 0x161   : > { %p955_p0 = por %p954_p12, %p953_p8 }
 0x162   : > { %p951_p2 = pneg %p950_p13 }
 0x164   : > { %p956_p1 = pnand %p955_p0, %p951_p2 }
 0x166   : > { %959 = shalt.err (!%p956_p1)
}
 0x167   : > { %805 = dma.vmem_to_hbm [thread:$0]  (%p1132_p9), %s1379_s22, 16, %s1377_s15, %s1382_s6   ;;  %v561_v42 = vld [vmem:[%s1286_s8] sm:$0x1]  ;;  %vm581_vm10 = vcmask 106496  }
 0x168   : > { %s630_s10 = sshll.u32 %s1286_s8, 4  ;;  %s628_s28 = scalar_lea.hbm %s1472_s1, %s1361_s23  ;;  %s631_s10 = int_to_ptr.vmem [resolvable:$true] %s630_s10 }
 0x169   : > { %s610_s24 = scalar_lea.sflag [#allocation4], %s1167_s30  ;;  %s960_s21 = scalar_lea.vmem %s631_s10, 16 }
 0x16a   : > { %p961_p3 = scmp.ne.s32.totalorder %s631_s10, %s960_s21  ;;  %s1056_s29 = smov [#allocation5]  }
 0x16b   : > { %s964_s5 = sshll.u32 %s1056_s29, 4  ;;  %s965_s5 = int_to_ptr.vmem [resolvable:$false] %s964_s5 }
 0x16c   : > { %p962_p5 = pnand %p961_p3, %p1132_p9  ;;  %s966_s22 = scalar_lea.vmem %s965_s5, 32 }
 0x16d   : > { %p967_p7 = scmp.lt.s32.totalorder %s631_s10, %s965_s5  ;;  %p968_p10 = scmp.lt.s32.totalorder %s966_s22, %s960_s21 }
 0x16e   : > { %p963_p6 = pneg %p962_p5 }
 0x16f   : > { %p969_p4 = por %p968_p10, %p967_p7 }
 0x171   : > { %p970_p13 = pnand %p969_p4, %p963_p6 }
 0x1b0   : > { %v578_v62 = vpop.permute.xlu1 %577 }
 0x1b1   : > { %v580_v1 = vadd.f32 %v578_v62, %v561_v42 }
 0x1b3   : > { %582 = vst.msk [vmem:[%s1286_s8] sm:$0x1] %vm581_vm10, %v580_v1 }
 0x1b4   : > { %973 = shalt.err (!%p970_p13)
}
 0x1b5   : > { %s974_s15 = scalar_lea.hbm %s628_s28, 16  ;;  %s978_s23 = scalar_lea.hbm %s1472_s1, 32 }
 0x1b6   : > { %p975_p2 = scmp.ne.s32.totalorder %s628_s28, %s974_s15  ;;  %p979_p0 = scmp.lt.s32.totalorder %s628_s28, %s1472_s1 }
 0x1b7   : > { %p980_p1 = scmp.lt.s32.totalorder %s978_s23, %s974_s15 }
 0x1b8   : > { %p976_p8 = pnand %p975_p2, %p1132_p9 }
 0x1b9   : > { %p981_p3 = por %p980_p1, %p979_p0 }
 0x1ba   : > { %p977_p12 = pneg %p976_p8 }
 0x1bc   : > { %p982_p5 = pnand %p981_p3, %p977_p12 }
 0x1be   : > { %985 = shalt.err (!%p982_p5)
}
 0x1bf   : > { %803 = dma.vmem_to_hbm [thread:$0]  (%p1132_p9), %s631_s10, 16, %s628_s28, %s610_s24  }
 0x1c0 PF: > { %s668_s7 = sand.u32 1, %s1024_s12   ;;  %p1480_p6 = scmp.ge.s32.totalorder %s1044_s17, 2 }
 0x1c1   : > { %s669_s18 = scalar_lea.sflag [#allocation4], %s668_s7 }
 0x1c2   : > { %p814_p7 = pnand %p1480_p6, %p1141_p11 }
 0x1c4   : > { %p815_p10 = pneg %p814_p7 }
 0x1c6   : > { %1015 = dma.done.wait (%p815_p10), %s669_s18, 16  }
 0x1c7   : > { %1017 = vsyncadd (%p815_p10), %s669_s18, 4294967280  ;;  %s676_s9 = sand.u32 1, %s785_s19  }
 0x1c8   : > { %s677_s11 = scalar_lea.sflag [#allocation7], %s676_s9 }
 0x1c9   : > { %1019 = dma.done.wait (%p815_p10), %s677_s11, 32  }
 0x1ca   : > { %1021 = vsyncadd (%p815_p10), %s677_s11, 4294967264  ;;  %s23_s17 = sadd.s32 1, %s1044_s17   ;;  %s1481_s12 = smov %s1028_s13 }
 0x1cb   : > { %p20_p9 = scmp.ge.s32.totalorder %s23_s17, 4   ;;  %s1482_s13 = smov %s1032_s14 }
 0x1cc   : > { %s1483_s14 = smov %s1139_s26  ;;  %s1484_s15 = smov %s1040_s16 }
 0x1cd   : > { %s1485_s16 = smov %s1487_s20  ;;  %22 = sbr.rel (!%p20_p9) target bundleno = 8 (0x8), region = 105 }
 0x1d2   :  { %689 = vsyncpa [#allocation3], 1 }
 0x1d3   :  { %691 = vsyncpa [#allocation3 + $0x1], 1 }
 0x1d4   :  { %692 = vsyncpa [#allocation4], 1 }
 0x1d5   :  { %694 = vsyncpa [#allocation4 + $0x1], 1 }
 0x1d6   :  { %695 = vsyncpa [#allocation7], 1 }
 0x1d7   :  { %697 = vsyncpa [#allocation7 + $0x1], 1 }

</bundles_post_ra>
